<compile_context>
chip_gen: v6e
topology: v6e:2x2x1
jax: 0.10.0
libtpu: 0.0.40
codegen_flags: <defaults>
</compile_context>

<pallas_src>
import functools
import math

import numpy as np
import jax
import jax.numpy as jnp
from jax.experimental import pallas as pl
from jax.experimental.pallas import tpu as pltpu


# ------------------------------- Pallas kernel -----------------------------------

def _modconv_kernel(wflat_ref, s_ref, p_ref, o_ref, *, demodulate, eps):
    # wflat_ref: (out, in*k*k)      equalized weights (already scaled by c), grid-constant
    # s_ref:     (1, 1, in*k*k)     per-batch style scale, repeated k*k times per in-chan
    # p_ref:     (1, in*k*k, t_hw)  im2col patches of the replicate-padded input
    # o_ref:     (1, out, t_hw)
    w = wflat_ref[...]                       # (O, IKK) f32
    s = s_ref[0]                             # (1, IKK)
    wmod = w * s                             # modulation, broadcast over output channels
    if demodulate:
        ssum = jnp.sum(wmod * wmod, axis=1, keepdims=True)        # (O, 1)
        wmod = wmod * jax.lax.rsqrt(ssum + eps)                   # EUP rsqrt
    p = p_ref[0]                             # (IKK, T_HW)
    o = jnp.dot(wmod, p, preferred_element_type=jnp.float32)      # single MXU matmul
    o_ref[0] = o.astype(o_ref.dtype)


# --------------------------------- wrapper ----------------------------------------

def conv2d_weight_modulate(x, s, weight, *, demodulate=True, eps=1e-8, hw_block=2048):
    """x: (B, Cin, H, W), s: (B, Cin), weight: (Cout, Cin, K, K) -> (B, Cout, H, W)."""
    b, cin, h, w_sp = x.shape
    cout, cin2, k, _ = weight.shape
    assert cin2 == cin
    pad = (k - 1) // 2
    c = 1.0 / math.sqrt(cin * k * k)
    ikk = cin * k * k
    hw = h * w_sp

    # Equalized-lr scale folded into the flattened weight (parameter-side glue).
    wflat = (weight.astype(jnp.float32) * c).reshape(cout, ikk)

    # Per-batch style scales aligned with the flattened (in, ky, kx) weight axis.
    s_exp = jnp.repeat(s.astype(jnp.float32), k * k, axis=1).reshape(b, 1, ikk)

    # Replicate padding + im2col (wrapper-side layout plumbing; hot matmul is in-kernel).
    xpad = jnp.pad(x, ((0, 0), (0, 0), (pad, pad), (pad, pad)), mode="edge")
    cols = []
    for ky in range(k):
        for kx in range(k):
            cols.append(xpad[:, :, ky:ky + h, kx:kx + w_sp])      # (b, cin, h, w)
    patches = jnp.stack(cols, axis=2)                             # (b, cin, k*k, h, w)
    patches = patches.reshape(b, ikk, hw).astype(jnp.float32)     # lane-dense last dim

    # Tile the spatial (lane) axis only when it is large; blocks stay multiples of 128.
    if hw > hw_block and hw % hw_block == 0 and hw_block % 128 == 0:
        t_hw = hw_block
    else:
        t_hw = hw
    n_hw = hw // t_hw

    kern = functools.partial(_modconv_kernel, demodulate=demodulate, eps=eps)
    out = pl.pallas_call(
        kern,
        out_shape=jax.ShapeDtypeStruct((b, cout, hw), jnp.float32),
        grid_spec=pltpu.PrefetchScalarGridSpec(
            num_scalar_prefetch=0,
            grid=(b, n_hw),
            in_specs=[
                pl.BlockSpec((cout, ikk), lambda n, j: (0, 0)),        # shared weights
                pl.BlockSpec((1, 1, ikk), lambda n, j: (n, 0, 0)),     # per-batch style
                pl.BlockSpec((1, ikk, t_hw), lambda n, j: (n, 0, j)),  # per-batch patches
            ],
            out_specs=pl.BlockSpec((1, cout, t_hw), lambda n, j: (n, 0, j)),
        ),
        compiler_params=pltpu.CompilerParams(
            dimension_semantics=("parallel", "parallel")),
    )(wflat, s_exp, patches)

    return out.reshape(b, cout, h, w_sp).astype(x.dtype)


# ------------------------------ plain-JAX reference --------------------------------

def ref_forward(x, s, weight, *, demodulate=True, eps=1e-8):
    b, cin, h, w_sp = x.shape
    cout, _, k, _ = weight.shape
    pad = (k - 1) // 2
    c = 1.0 / math.sqrt(cin * k * k)
    wts = (weight * c)[None] * s[:, None, :, None, None]          # (b, out, in, k, k)
    if demodulate:
        sigma_inv = jax.lax.rsqrt(
            jnp.sum(wts ** 2, axis=(2, 3, 4), keepdims=True) + eps)
        wts = wts * sigma_inv
    xpad = jnp.pad(x, ((0, 0), (0, 0), (pad, pad), (pad, pad)), mode="edge")
    xr = xpad.reshape(1, b * cin, h + 2 * pad, w_sp + 2 * pad)
    wr = wts.reshape(b * cout, cin, k, k)
    out = jax.lax.conv_general_dilated(
        xr, wr, window_strides=(1, 1), padding="VALID",
        dimension_numbers=("NCHW", "OIHW", "NCHW"),
        feature_group_count=b,
        precision=jax.lax.Precision.HIGHEST)
    return out.reshape(b, cout, h, w_sp)


# ------------------------------------ main ----------------------------------------

if __name__ == "__main__":
    B, CIN, COUT, K, H, W = 2, 4, 4, 3, 16, 16
    key = jax.random.PRNGKey(0)
    kx, ks, kw = jax.random.split(key, 3)
    x = jax.random.normal(kx, (B, CIN, H, W), dtype=jnp.float32)
    s = jax.random.normal(ks, (B, CIN), dtype=jnp.float32) + 1.0     # style scales
    weight = jax.random.normal(kw, (COUT, CIN, K, K), dtype=jnp.float32)

    out = conv2d_weight_modulate(x, s, weight, demodulate=True, eps=1e-8)
    out = jax.block_until_ready(out)

    assert out.shape == (B, COUT, H, W)
    assert out.dtype == jnp.float32

    ref = ref_forward(x, s, weight, demodulate=True, eps=1e-8)
    np.testing.assert_allclose(np.asarray(out), np.asarray(ref),
                               rtol=1e-2, atol=1e-2)

    print("KERNEL_OK")
</pallas_src>

<mosaic_0001>
module attributes {stable_mosaic.version = 11 : i64} {
  func.func @_modconv_kernel(%arg0: i32, %arg1: i32, %arg2: memref<4x36xf32, #tpu.memory_space<vmem>>, %arg3: memref<1x1x36xf32, #tpu.memory_space<vmem>>, %arg4: memref<1x36x256xf32, #tpu.memory_space<vmem>>, %arg5: memref<1x4x256xf32, #tpu.memory_space<vmem>>) attributes {dimension_semantics = [#tpu.dimension_semantics<parallel>, #tpu.dimension_semantics<parallel>], iteration_bounds = array<i64: 2, 1>, scalar_prefetch = 0 : i64, scratch_operands = 0 : i64, tpu.core_type = #tpu.core_type<tc>, window_params = [{pipeline_mode = #tpu.pipeline_mode<synchronous>, transform_indices = @transform_0, window_bounds = array<i64: 4, 36>}, {transform_indices = @transform_1, window_bounds = array<i64: 1, 1, 36>}, {transform_indices = @transform_2, window_bounds = array<i64: 1, 36, 256>}, {transform_indices = @transform_3, window_bounds = array<i64: 1, 4, 256>}]} {
    %c0 = arith.constant 0 : index
    %c0_0 = arith.constant 0 : index
    %0 = vector.load %arg2[%c0, %c0_0] : memref<4x36xf32, #tpu.memory_space<vmem>>, vector<4x36xf32>
    %c0_1 = arith.constant 0 : index
    %c0_2 = arith.constant 0 : index
    %c0_3 = arith.constant 0 : index
    %1 = vector.load %arg3[%c0_1, %c0_2, %c0_3] : memref<1x1x36xf32, #tpu.memory_space<vmem>>, vector<1x1x36xf32>
    %2 = vector.shape_cast %1 : vector<1x1x36xf32> to vector<1x36xf32>
    %3 = vector.broadcast %2 : vector<1x36xf32> to vector<4x36xf32>
    %4 = arith.mulf %0, %3 : vector<4x36xf32>
    %5 = arith.mulf %4, %4 : vector<4x36xf32>
    %cst = arith.constant dense<0.000000e+00> : vector<4xf32>
    %6 = vector.multi_reduction <add>, %5, %cst [1] : vector<4x36xf32> to vector<4xf32>
    %7 = vector.shape_cast %6 : vector<4xf32> to vector<4x1xf32>
    %cst_4 = arith.constant 9.99999993E-9 : f32
    %8 = vector.broadcast %cst_4 : f32 to vector<4x1xf32>
    %9 = arith.addf %7, %8 : vector<4x1xf32>
    %10 = math.rsqrt %9 : vector<4x1xf32>
    %11 = vector.broadcast %10 : vector<4x1xf32> to vector<4x36xf32>
    %12 = arith.mulf %4, %11 : vector<4x36xf32>
    %c0_5 = arith.constant 0 : index
    %c0_6 = arith.constant 0 : index
    %c0_7 = arith.constant 0 : index
    %13 = vector.load %arg4[%c0_5, %c0_6, %c0_7] : memref<1x36x256xf32, #tpu.memory_space<vmem>>, vector<1x36x256xf32>
    %14 = vector.shape_cast %13 : vector<1x36x256xf32> to vector<36x256xf32>
    %cst_8 = arith.constant dense<0.000000e+00> : vector<4x256xf32>
    %15 = tpu.matmul %12, %14, %cst_8 {dimension_numbers = #tpu.dot_dimension_numbers<[1], [0], [0], [1], [0, 0, 1, 1], [], []>} : vector<4x36xf32>, vector<36x256xf32>, vector<4x256xf32> -> vector<4x256xf32>
    %c0_9 = arith.constant 0 : index
    %c0_10 = arith.constant 0 : index
    %c0_11 = arith.constant 0 : index
    %16 = vector.load %arg5[%c0_9, %c0_10, %c0_11] : memref<1x4x256xf32, #tpu.memory_space<vmem>>, vector<1x4x256xf32>
    %17 = vector.shape_cast %16 : vector<1x4x256xf32> to vector<4x256xf32>
    %18 = vector.shape_cast %15 : vector<4x256xf32> to vector<1x4x256xf32>
    tpu.vector_store %arg5[%c0_9, %c0_10, %c0_11], %18 {strides = array<i32>} : memref<1x4x256xf32, #tpu.memory_space<vmem>>, vector<1x4x256xf32>,
    return
  }
  func.func @transform_0(%arg0: i32, %arg1: i32) -> (i32, i32) {
    %c0_i32 = arith.constant 0 : i32
    %c0_i32_0 = arith.constant 0 : i32
    %c0_i32_1 = arith.constant 0 : i32
    return %c0_i32, %c0_i32_0 : i32, i32
  }
  func.func @transform_1(%arg0: i32, %arg1: i32) -> (i32, i32, i32) {
    %c0_i32 = arith.constant 0 : i32
    %c0_i32_0 = arith.constant 0 : i32
    %c0_i32_1 = arith.constant 0 : i32
    return %arg0, %c0_i32, %c0_i32_0 : i32, i32, i32
  }
  func.func @transform_2(%arg0: i32, %arg1: i32) -> (i32, i32, i32) {
    %c0_i32 = arith.constant 0 : i32
    %c0_i32_0 = arith.constant 0 : i32
    return %arg0, %c0_i32, %arg1 : i32, i32, i32
  }
  func.func @transform_3(%arg0: i32, %arg1: i32) -> (i32, i32, i32) {
    %c0_i32 = arith.constant 0 : i32
    %c0_i32_0 = arith.constant 0 : i32
    return %arg0, %c0_i32, %arg1 : i32, i32, i32
  }
}

</mosaic_0001>

<bundles_post_ra>
// kernel: tpu_custom_call.1
= control target key start
LH: loop header
LB: loop body
LE: loop exit
PB: predicated region body
PF: predicated region fallthrough
CT: control target
= control target key end

     0   :  { %8 = vsyncpa [#allocation3], 0  ;;  %s711_s0 = inlined_call_operand.vmem [shape: f32[4,36], index: 0, kind: input, shape index: {}]   ;;  %s712_s1 = inlined_call_operand.vmem [shape: f32[2,1,36], index: 1, kind: input, shape index: {}]   ;;  %s713_s2 = inlined_call_operand.vmem [shape: f32[2,36,256], index: 2, kind: input, shape index: {}]   ;;  %s714_s3 = inlined_call_operand.hbm [shape: f32[2,4,256], index: 3, kind: output, shape index: {}]  }
   0x1   :  { %10 = vsyncpa [#allocation3 + $0x1], 0  ;;  %s606_s12 = smov 0   ;;  %s608_s13 = smov 0  }
   0x2   :  { %s610_s14 = smov 0   ;;  %s612_s15 = smov 0  }
   0x3   :  { %s614_s16 = smov 0   ;;  %s616_s17 = smov 0  }
   0x4 LB: > { %s430_s18 = sadd.s32 4294967295, %s582_s17   ;;  %s431_s19 = sadd.s32 4294967294, %s582_s17   ;;  %s582_s17 = sphi %s616_s17, %s16_s17   ;;  %s578_s16 = sphi %s614_s16, %s721_s16   ;;  %s574_s15 = sphi %s612_s15, %s720_s15   ;;  %s570_s14 = sphi %s610_s14, %s719_s14   ;;  %s566_s13 = sphi %s608_s13, %s718_s13   ;;  %s562_s12 = sphi %s606_s12, %s717_s12  }
   0x5   : > { %s28_s20 = sadd.s32 1, %s578_s16  ;;  %s112_s21 = sadd.s32 1, %s570_s14 }
   0x6   : > { %p30_p0 = scmp.ge.s32.totalorder %s28_s20, 2  ;;  %p122_p1 = scmp.ne.s32.totalorder %s570_s14, %s566_s13 }
   0x7   : > { %p123_p2 = scmp.eq.s32.totalorder %s430_s18, 1  ;;  %p128_p3 = scmp.ne.s32.totalorder %s566_s13, %s562_s12 }
   0x8   : > { %s723_s20 = smov (%p30_p0, %s28_s20), 0  ;;  %p129_p5 = scmp.eq.s32.totalorder %s431_s19, 1 }
   0x9   : > { %p646_p4 = por %p123_p2, %p122_p1  ;;  %s107_s23 = ssub.s32 %s578_s16, %s723_s20 }
   0xa   : > { %p434_p6 = scmp.ge.s32.totalorder %s582_s17, 1  ;;  %p110_p7 = scmp.eq.s32.totalorder %s107_s23, 0 }
   0xb   : > { %p653_p8 = por %p129_p5, %p128_p3  ;;  %p169_p9 = scmp.lt.s32.totalorder %s582_s17, 3 }
   0xc   : > { %s659_s25 = scalar_select %p110_p7, %s570_s14, %s112_s21  }
   0xd   : > { %p170_p10 = pnand %p434_p6, %p169_p9 }
   0xe   : > { %p200_p11 = scmp.lt.s32.totalorder (!%p170_p10), %s574_s15, 1  ;;  %s197_s9 = sand.u32 (!%p170_p10), 1, %s566_s13  }
   0xf   : > { %173 = sbr.rel (%p170_p10) target bundleno = 395 (0x18b), region = 32  ;;  %s435_s10 = sshll.u32 (!%p170_p10), %s197_s9, 3 }
  0x10   : > { %s446_s11 = sshll.u32 (!%p170_p10), %s574_s15, 7  ;;  %s199_s18 = scalar_lea.vmem (!%p170_p10), [#allocation2], %s435_s10 }
  0x11   : > { %s345_s19 = sshll.u32 (!%p170_p10), %s199_s18, 4  ;;  %s329_s27 = scalar_lea.sflag (!%p170_p10), [#allocation3], %s197_s9  ;;  %s346_s19 = int_to_ptr.vmem [resolvable:$true] %s345_s19 }
  0x12   : > { %s506_s28 = scalar_lea.vmem (!%p170_p10), %s346_s19, 128  ;;  %s585_s29 = smov (!%p170_p10), [#allocation2]  }
  0x13   : > { %p507_p12 = scmp.ne.s32.totalorder (!%p170_p10), %s346_s19, %s506_s28  ;;  %s510_s30 = sshll.u32 (!%p170_p10), %s585_s29, 4  ;;  %s511_s30 = int_to_ptr.vmem [resolvable:$false] %s510_s30 }
  0x14   : > { %s201_s26 = scalar_select %p200_p11, %s574_s15, 1  ;;  %v214_v0 = vld [vmem:[%s711_s0] sm:$0xf]  ;;  %vm224_vm0 = vcmask 289792   ;;  %vm245_vm1 = vcmask 1043456   ;;  %v584_v10 = vmov 0.0  }
  0x15   : > { %316 = vmatprep.mubr.f32.mxu0 %v584_v10  ;;  %vm241_vm2 = vcmask 293888   ;;  %p508_p13 = pnand %p507_p12, %p646_p4  ;;  %s512_s15 = scalar_lea.vmem %s511_s30, 256 }
  0x16   : > { %s202_s4 = scalar_lea.vmem %s712_s1, %s201_s26  ;;  %s447_s5 = smul.u32 80, %s201_s26 }
  0x17   : > { %v437_v1 = vld [vmem:[%s202_s4] ss:$0 sm:$0xff]  ;;  %s343_s26 = scalar_lea.hbm %s714_s3, %s446_s11  ;;  %p509_p0 = pneg %p508_p13 }
  0x18   : > { %v222_v2 = vmul.f32 %v437_v1, %v214_v0  ;;  %s211_s8 = scalar_lea.vmem %s713_s2, %s447_s5  ;;  %p513_p1 = scmp.lt.s32.totalorder %s346_s19, %s511_s30 }
  0x19   : > { %v240_v5 = vld [vmem:[%s211_s8 + $0x48] sm:$0xf]  ;;  %v239_v6 = vld [vmem:[%s211_s8 + $0x40] sm:$0xf]  ;;  %v238_v7 = vld [vmem:[%s211_s8 + $0x38] sm:$0xff]  ;;  %p514_p2 = scmp.lt.s32.totalorder %s512_s15, %s506_s28 }
  0x1a   : > { %v223_v3 = vmul.f32 %v222_v2, %v222_v2  ;;  %438 = vmatprep.subr.msk.mxu0 %vm245_vm1, %v240_v5  ;;  %v237_v8 = vld [vmem:[%s211_s8 + $0x30] sm:$0xff]  ;;  %v236_v9 = vld [vmem:[%s211_s8 + $0x28] sm:$0xff]  ;;  %v235_v11 = vld [vmem:[%s211_s8 + $0x20] sm:$0xff] }
  0x1b   : > { %439 = vmatpush1.msk.msra.mxu0 %vm245_vm1, %v239_v6  ;;  %v234_v12 = vld [vmem:[%s211_s8 + $0x18] sm:$0xff]  ;;  %v233_v13 = vld [vmem:[%s211_s8 + $0x10] sm:$0xff]  ;;  %v232_v14 = vld [vmem:[%s211_s8 + $0x8] sm:$0xff]  ;;  %p515_p3 = por %p514_p2, %p513_p1 }
  0x1c   : > { %v225_v4 = vsel %vm224_vm0, %v223_v3, 0.0  ;;  %276 = vmatprep.subr.mxu0 %v238_v7  ;;  %v231_v15 = vld [vmem:[%s211_s8] sm:$0xff] }
  0x1d   : > { %226 = vadd.xlane.f32.xlu0 %v225_v4  ;;  %277 = vmatpush1.msra.mxu0 %v237_v8  ;;  %p516_p5 = pnand %p515_p3, %p509_p0 }
  0x1e   : > { %278 = vmatprep.subr.mxu0 %v236_v9 }
  0x1f   : > { %279 = vmatpush1.msra.mxu0 %v235_v11 }
  0x20   : > { %280 = vmatprep.subr.mxu0 %v234_v12 }
  0x21   : > { %281 = vmatpush1.msra.mxu0 %v233_v13 }
  0x22   : > { %282 = vmatprep.subr.mxu0 %v232_v14 }
  0x23   : > { %283 = vmatpush1.msra.mxu0 %v231_v15 }
  0xa6   : > { %v227_v16 = vpop.xlane.xlu0 %226 }
  0xa7   : > { %v228_v17 = vadd.f32 1e-08, %v227_v16 }
  0xa9   : > { %504 = vrsqrt.f32 %v228_v17 }
  0xb6   : > { %v505_v18 = vpop.eup %504 }
  0xb7   : > { %v230_v19 = vmul.f32 %v505_v18, %v222_v2 }
  0xb9   : > { %440 = vmatmul.mubr.msk.f32.vlgmr.msra.gmra.mxu0 %vm241_vm2, %v230_v19 }
 0x179   : > { %v318_v20 = vpop.f32.mrf.mxu0 }
 0x17b   : > { %v320_v21 = vpop.f32.mrf.mxu0 }
 0x17c   : > { %v325_v22 = vcombine.low %v318_v20, %v320_v21 }
 0x17e   : > { %327 = vst [vmem:[%s199_s18] sm:$0xff] %v325_v22 }
 0x17f   : > { %519 = shalt.err (!%p516_p5)
}
 0x180   : > { %s520_s4 = scalar_lea.hbm %s343_s26, 128  ;;  %s524_s7 = scalar_lea.hbm %s714_s3, 256 }
 0x181   : > { %p521_p6 = scmp.ne.s32.totalorder %s343_s26, %s520_s4  ;;  %p525_p10 = scmp.lt.s32.totalorder %s343_s26, %s714_s3 }
 0x182   : > { %p526_p11 = scmp.lt.s32.totalorder %s524_s7, %s520_s4 }
 0x183   : > { %p522_p7 = pnand %p521_p6, %p646_p4 }
 0x184   : > { %p527_p12 = por %p526_p11, %p525_p10 }
 0x185   : > { %p523_p9 = pneg %p522_p7 }
 0x187   : > { %p528_p13 = pnand %p527_p12, %p523_p9 }
 0x189   : > { %531 = shalt.err (!%p528_p13)
}
 0x18a   : > { %448 = dma.vmem_to_hbm [thread:$0]  (%p646_p4), %s346_s19, 128, %s343_s26, %s329_s27  }
 0x18b PF: > { %p454_p0 = scmp.ge.s32.totalorder %s582_s17, 2  ;;  %s357_s10 = sand.u32 1, %s562_s12  }
 0x18c   : > { %s358_s11 = scalar_lea.sflag [#allocation3], %s357_s10 }
 0x18d   : > { %p451_p1 = pnand %p454_p0, %p653_p8 }
 0x18f   : > { %p452_p2 = pneg %p451_p1 }
 0x191   : > { %557 = dma.done.wait (%p452_p2), %s358_s11, 128  }
 0x192   : > { %559 = vsyncadd (%p452_p2), %s358_s11, 4294967168  ;;  %s16_s17 = sadd.s32 1, %s582_s17   ;;  %s717_s12 = smov %s566_s13 }
 0x193   : > { %p13_p3 = scmp.ge.s32.totalorder %s16_s17, 4   ;;  %s718_s13 = smov %s570_s14 }
 0x194   : > { %s719_s14 = smov %s659_s25  ;;  %s720_s15 = smov %s578_s16 }
 0x195   : > { %s721_s16 = smov %s723_s20  ;;  %15 = sbr.rel (!%p13_p3) target bundleno = 4 (0x4), region = 70 }
 0x19a   :  { %363 = vsyncpa [#allocation3], 1 }
 0x19b   :  { %365 = vsyncpa [#allocation3 + $0x1], 1 }

</bundles_post_ra>
